<compile_context>
chip_gen: v7x
topology: tpu7x:2x2x1
jax: 0.10.0
libtpu: 0.0.40
codegen_flags: <defaults>
</compile_context>

<pallas_src>
import functools

import jax
import jax.numpy as jnp
from jax.experimental import pallas as pl
from jax.experimental.pallas import tpu as pltpu


def _round_up(x, m):
    return (x + m - 1) // m * m


def _vmem_capacity_bytes():
    """Physical VMEM per TensorCore (generation-aware), with a safe fallback."""
    try:
        info = pltpu.get_tpu_info()
        cap = int(getattr(info, "vmem_capacity_bytes", 0) or 0)
        if cap > 0:
            return cap
    except Exception:
        pass
    # Conservative fallback: assume the smallest current part (v7x, 64 MiB/TC).
    return 64 * 1024 * 1024


def _lora_merge_kernel(w_ref, b_ref, a_ref, o_ref, *, scale):
    # Rank-r update on the MXU; negligible compute, fully hidden behind the
    # W HBM stream.  `scale` is folded into the (rank, tile_n) A operand so
    # the per-element multiply touches rank*tile_n elements, not tile_m*tile_n.
    delta = jnp.dot(b_ref[...], a_ref[...] * scale,
                    preferred_element_type=jnp.float32)
    # NOTE: ragged boundary blocks compute on out-of-bounds rows/cols of W,
    # lora_B and lora_A; those results land in output positions Pallas
    # discards at the array edge, so no masking is needed (do not "fix" this
    # into masked compute).
    o_ref[...] = (w_ref[...].astype(jnp.float32) + delta).astype(o_ref.dtype)


def lora_parametrization(original_weights, lora_A, lora_B, *, alpha=1, rank=1,
                         enabled=True, tile_m=512, tile_n=2048,
                         donate_weights=False):
    """out = W + (lora_B @ lora_A).reshape(W.shape) * (alpha / rank)."""
    if not enabled:
        return original_weights

    features_in, r = lora_B.shape
    r2, features_out = lora_A.shape
    assert r == r2 == rank, "rank mismatch between lora_A / lora_B / rank arg"
    assert original_weights.size == features_in * features_out

    w2d = original_weights.reshape(features_in, features_out)
    scale = float(alpha) / float(rank)
    itemsize = w2d.dtype.itemsize
    sub = max(8, 32 // itemsize)          # sublane multiple: 8 f32, 16 bf16

    # --- tile selection -----------------------------------------------------
    # Block dims must be a multiple of (sub, 128) or equal the full extent.
    # Prefer a wide tile_n (lane dim): row-major W -> long contiguous bursts
    # and unmasked lane-dense stores.
    if features_in <= tile_m:
        tile_m = features_in                       # full extent -> legal
    else:
        tile_m = max(sub, (tile_m // sub) * sub)
    if features_out <= tile_n:
        tile_n = features_out                      # full extent -> legal
    else:
        tile_n = max(128, (tile_n // 128) * 128)

    # --- generation-aware VMEM budget ----------------------------------------
    def _buf_bytes(rows, cols):
        return _round_up(rows, sub) * _round_up(cols, 128) * itemsize

    def _vmem_est(tm, tn):
        return (2 * _buf_bytes(tm, tn)                  # W tiles, dbl-buffered
                + 2 * _buf_bytes(tm, tn)                # out tiles, dbl-buffered
                + 2 * _buf_bytes(tm, rank)              # lora_B row block
                + 2 * _buf_bytes(max(rank, sub), tn))   # lora_A col block

    vmem_cap = _vmem_capacity_bytes()
    budget = max(16 * 1024 * 1024,
                 min(vmem_cap * 3 // 4, vmem_cap - 16 * 1024 * 1024))

    # Shrink tiles (lane dim first stays wide as long as possible) if a
    # caller-chosen tile would blow the per-generation VMEM budget; with the
    # 512x2048 defaults this loop is a no-op on every current part.
    while _vmem_est(tile_m, tile_n) > budget:
        if tile_n > 512:
            tile_n = max(128, ((tile_n // 2) // 128) * 128)
        elif tile_m > sub:
            tile_m = max(sub, ((tile_m // 2) // sub) * sub)
        else:
            break

    grid_m = (features_in + tile_m - 1) // tile_m      # cdiv: ragged shapes OK
    grid_n = (features_out + tile_n - 1) // tile_n
    # NOTE(v7x megacore): the grid only collapses to a single block when the
    # whole matrix fits in one tile (a few MiB), where 2-TC sharding does not
    # matter; otherwise grid_m*grid_n >= 2 keeps both TensorCores fed.

    vmem_est = _vmem_est(tile_m, tile_n)
    vmem_limit = int(min(budget,
                         max(vmem_est + vmem_est // 2, 16 * 1024 * 1024)))

    cost = pl.CostEstimate(
        flops=2 * features_in * features_out * rank,
        transcendentals=0,
        bytes_accessed=(2 * features_in * features_out * itemsize
                        + int(lora_A.size) * lora_A.dtype.itemsize
                        + int(lora_B.size) * lora_B.dtype.itemsize),
    )

    out2d = pl.pallas_call(
        functools.partial(_lora_merge_kernel, scale=scale),
        out_shape=jax.ShapeDtypeStruct((features_in, features_out), w2d.dtype),
        grid_spec=pltpu.PrefetchScalarGridSpec(
            num_scalar_prefetch=0,
            grid=(grid_m, grid_n),
            in_specs=[
                # W tile: the only real HBM stream.
                pl.BlockSpec((tile_m, tile_n), lambda i, j: (i, j)),
                # lora_B row block: resident across the inner j sweep.
                pl.BlockSpec((tile_m, rank), lambda i, j: (i, 0)),
                # lora_A column block: tiny per-step DMA, fully hidden.
                pl.BlockSpec((rank, tile_n), lambda i, j: (0, j)),
            ],
            out_specs=pl.BlockSpec((tile_m, tile_n), lambda i, j: (i, j)),
        ),
        # Only alias W->out when the caller actually donates W; otherwise XLA
        # inserts a defensive full copy (extra read+write of the whole W).
        input_output_aliases=({0: 0} if donate_weights else {}),
        compiler_params=pltpu.CompilerParams(
            dimension_semantics=("parallel", "parallel"),
            vmem_limit_bytes=vmem_limit),
        cost_estimate=cost,
    )(w2d, lora_B, lora_A)

    return out2d.reshape(original_weights.shape)


if __name__ == "__main__":
    key = jax.random.PRNGKey(0)

    # ---- test 1: small, module-consistent shapes (divisible) --------------
    features_in, features_out = 32, 256
    rank, alpha = 4, 8
    k_w, k_a = jax.random.split(key, 2)

    lora_A = jax.random.normal(k_a, (rank, features_out), dtype=jnp.float32)
    lora_B = jax.random.normal(k_w, (features_in, rank), dtype=jnp.float32) * 0.1
    original_weights = jax.random.normal(
        jax.random.fold_in(key, 7), (features_in, features_out), dtype=jnp.float32)

    out = lora_parametrization(original_weights, lora_A, lora_B,
                               alpha=alpha, rank=rank, enabled=True)
    out = jax.block_until_ready(out)

    ref = original_weights + (lora_B @ lora_A).reshape(
        original_weights.shape) * (alpha / rank)
    assert out.shape == original_weights.shape
    assert out.dtype == original_weights.dtype
    assert jnp.allclose(out, ref, atol=1e-5, rtol=1e-5)

    # enabled=False path (identity).
    out_disabled = jax.block_until_ready(
        lora_parametrization(original_weights, lora_A, lora_B,
                             alpha=alpha, rank=rank, enabled=False))
    assert jnp.array_equal(out_disabled, original_weights)

    # donated / in-place-merge path (aliasing only applied when requested).
    out_donated = jax.block_until_ready(
        lora_parametrization(original_weights, lora_A, lora_B,
                             alpha=alpha, rank=rank, enabled=True,
                             donate_weights=True))
    assert jnp.allclose(out_donated, ref, atol=1e-5, rtol=1e-5)

    # ---- test 2: ragged shapes + multi-tile grid (cdiv path) ---------------
    fi2, fo2, r2a, al2 = 40, 200, 3, 3
    kA2, kB2, kW2 = jax.random.split(jax.random.fold_in(key, 11), 3)
    A2 = jax.random.normal(kA2, (r2a, fo2), dtype=jnp.float32)
    B2 = jax.random.normal(kB2, (fi2, r2a), dtype=jnp.float32) * 0.1
    W2 = jax.random.normal(kW2, (fi2, fo2), dtype=jnp.float32)

    out2 = jax.block_until_ready(
        lora_parametrization(W2, A2, B2, alpha=al2, rank=r2a, enabled=True,
                             tile_m=16, tile_n=128))
    ref2 = W2 + (B2 @ A2).reshape(W2.shape) * (al2 / r2a)
    assert out2.shape == W2.shape and out2.dtype == W2.dtype
    assert jnp.allclose(out2, ref2, atol=1e-5, rtol=1e-5)

    print("KERNEL_OK")
</pallas_src>

<mosaic_0001>
module attributes {stable_mosaic.version = 11 : i64} {
  func.func @_lora_merge_kernel(%arg0: i32, %arg1: i32, %arg2: memref<32x256xf32, #tpu.memory_space<vmem>>, %arg3: memref<32x4xf32, #tpu.memory_space<vmem>>, %arg4: memref<4x256xf32, #tpu.memory_space<vmem>>, %arg5: memref<32x256xf32, #tpu.memory_space<vmem>>) attributes {dimension_semantics = [#tpu.dimension_semantics<parallel>, #tpu.dimension_semantics<parallel>], iteration_bounds = array<i64: 1, 1>, scalar_prefetch = 0 : i64, scratch_operands = 0 : i64, tpu.core_type = #tpu.core_type<tc>, window_params = [{transform_indices = @transform_0, window_bounds = array<i64: 32, 256>}, {transform_indices = @transform_1, window_bounds = array<i64: 32, 4>}, {transform_indices = @transform_2, window_bounds = array<i64: 4, 256>}, {transform_indices = @transform_3, window_bounds = array<i64: 32, 256>}]} {
    %c0 = arith.constant 0 : index
    %c0_0 = arith.constant 0 : index
    %0 = vector.load %arg3[%c0, %c0_0] : memref<32x4xf32, #tpu.memory_space<vmem>>, vector<32x4xf32>
    %c0_1 = arith.constant 0 : index
    %c0_2 = arith.constant 0 : index
    %1 = vector.load %arg4[%c0_1, %c0_2] : memref<4x256xf32, #tpu.memory_space<vmem>>, vector<4x256xf32>
    %cst = arith.constant 2.000000e+00 : f32
    %2 = vector.broadcast %cst : f32 to vector<4x256xf32>
    %3 = arith.mulf %1, %2 : vector<4x256xf32>
    %cst_3 = arith.constant dense<0.000000e+00> : vector<32x256xf32>
    %4 = tpu.matmul %0, %3, %cst_3 {dimension_numbers = #tpu.dot_dimension_numbers<[1], [0], [0], [1], [0, 0, 1, 1], [], []>} : vector<32x4xf32>, vector<4x256xf32>, vector<32x256xf32> -> vector<32x256xf32>
    %c0_4 = arith.constant 0 : index
    %c0_5 = arith.constant 0 : index
    %5 = vector.load %arg2[%c0_4, %c0_5] : memref<32x256xf32, #tpu.memory_space<vmem>>, vector<32x256xf32>
    %6 = arith.addf %5, %4 : vector<32x256xf32>
    %c0_6 = arith.constant 0 : index
    %c0_7 = arith.constant 0 : index
    %7 = vector.load %arg5[%c0_6, %c0_7] : memref<32x256xf32, #tpu.memory_space<vmem>>, vector<32x256xf32>
    tpu.vector_store %arg5[%c0_6, %c0_7], %6 {strides = array<i32>} : memref<32x256xf32, #tpu.memory_space<vmem>>, vector<32x256xf32>,
    return
  }
  func.func @transform_0(%arg0: i32, %arg1: i32) -> (i32, i32) {
    %c0_i32 = arith.constant 0 : i32
    return %arg0, %arg1 : i32, i32
  }
  func.func @transform_1(%arg0: i32, %arg1: i32) -> (i32, i32) {
    %c0_i32 = arith.constant 0 : i32
    %c0_i32_0 = arith.constant 0 : i32
    return %arg0, %c0_i32 : i32, i32
  }
  func.func @transform_2(%arg0: i32, %arg1: i32) -> (i32, i32) {
    %c0_i32 = arith.constant 0 : i32
    %c0_i32_0 = arith.constant 0 : i32
    return %c0_i32, %arg1 : i32, i32
  }
  func.func @transform_3(%arg0: i32, %arg1: i32) -> (i32, i32) {
    %c0_i32 = arith.constant 0 : i32
    return %arg0, %arg1 : i32, i32
  }
}

</mosaic_0001>

<bundles_post_ra>
// kernel: tpu_custom_call.1
= control target key start
LH: loop header
LB: loop body
LE: loop exit
PB: predicated region body
PF: predicated region fallthrough
CT: control target
= control target key end

     0   :  { %8 = vsyncpa [#allocation3], 0  ;;  %s316_s0 = inlined_call_operand.hbm [shape: f32[32,256], index: 0, kind: input, shape index: {}]   ;;  %s317_s1 = inlined_call_operand.vmem [shape: f32[32,4], index: 1, kind: input, shape index: {}]   ;;  %s318_s2 = inlined_call_operand.vmem [shape: f32[4,256], index: 2, kind: input, shape index: {}]   ;;  %s319_s3 = inlined_call_operand.hbm [shape: f32[32,256], index: 3, kind: output, shape index: {}]  }
   0x1   :  { %9 = vsyncpa [#allocation4], 0  ;;  %s246_s12 = smov [#allocation2]   ;;  %s198_s16 = scalar_lea.hbm %s316_s0, 1024 }
   0x2   :  { %s15_s13 = sshll.u32 %s246_s12, 4  ;;  %p199_p0 = scmp.ne.s32.totalorder %s316_s0, %s198_s16  ;;  %s16_s13 = int_to_ptr.vmem [resolvable:$true] %s15_s13 }
   0x3   :  { %p202_p1 = scmp.lt.u32.totalorder %s198_s16, %s316_s0 }
   0x5   :  { %p204_p2 = pnand %p202_p1, %p199_p0 }
   0x7   :  { %207 = shalt.err (!%p204_p2)
}
   0x8   :  { %s208_s21 = scalar_lea.vmem %s16_s13, 1024  ;;  %p213_p4 = scmp.lt.s32.totalorder %s16_s13, %s16_s13 }
   0x9   :  { %p209_p3 = scmp.ne.s32.totalorder %s16_s13, %s208_s21  ;;  %p214_p5 = scmp.lt.s32.totalorder %s208_s21, %s208_s21 }
   0xb   :  { %p215_p6 = por %p214_p5, %p213_p4 }
   0xd   :  { %p216_p7 = pnand %p215_p6, %p209_p3 }
   0xf   :  { %219 = shalt.err (!%p216_p7)
}
  0x10   :  { %s247_s22 = smov 256   ;;  %s248_s23 = smov 16  }
  0x11   :  { %21 = dma.hbm_to_vmem [thread:$0]  %s316_s0, 1024, %s16_s13, [#allocation3], %s247_s22, %s247_s22, %s248_s23  }
  0x12   :  { %242 = dma.done.wait [#allocation3], 1024  }
  0x13   :  { %243 = vsyncadd [#allocation3], 4294966272  ;;  %v249_v0 = vmov 0.0   ;;  %v33_v1 = vld [vmem:[%s318_s2] sm:$0xff]  ;;  %vm50_vm0 = vcmask 1043456   ;;  %vm37_vm1 = vcmask 31744  }
  0x14   :  { %119 = vmatprep.mubr.f32.mxu0 %v249_v0  ;;  %131 = vmatprep.mubr.f32.mxu1 %v249_v0  ;;  %v34_v2 = vmul.f32 2.0, %v33_v1  ;;  %v29_v4 = vld [vmem:[%s317_s1] sm:$0xff]  ;;  %v31_v5 = vld [vmem:[%s317_s1 + $0x10] sm:$0xff]  ;;  %v30_v6 = vld [vmem:[%s317_s1 + $0x8] sm:$0xff] }
  0x15   :  { %v32_v7 = vld [vmem:[%s317_s1 + $0x18] sm:$0xff]  ;;  %v144_v8 = vld [vmem:[#allocation2] sm:$0xff]  ;;  %v145_v10 = vld [vmem:[#allocation2 + $0x8] sm:$0xff]  ;;  %s250_s1 = smov [#allocation5]  }
  0x16   :  { %v36_v3 = vcombine.high %v34_v2, %v34_v2  ;;  %v148_v9 = vld [vmem:[#allocation2 + $0x20] sm:$0xff]  ;;  %v149_v11 = vld [vmem:[#allocation2 + $0x28] sm:$0xff]  ;;  %v146_v20 = vld [vmem:[#allocation2 + $0x10] sm:$0xff]  ;;  %s173_s7 = sshll.u32 %s250_s1, 4  ;;  %s174_s7 = int_to_ptr.vmem [resolvable:$true] %s173_s7 }
  0x17   :  { %v150_v21 = vld [vmem:[#allocation2 + $0x30] sm:$0xff]  ;;  %v147_v22 = vld [vmem:[#allocation2 + $0x18] sm:$0xff]  ;;  %s220_s8 = scalar_lea.vmem %s174_s7, 1024  ;;  %p225_p9 = scmp.lt.s32.totalorder %s174_s7, %s174_s7 }
  0x18   :  { %185 = vmatprep.subr.msk.mxu0 %vm50_vm0, %v36_v3  ;;  %191 = vmatprep.subr.msk.mxu1 %vm50_vm0, %v36_v3  ;;  %v151_v23 = vld [vmem:[#allocation2 + $0x38] sm:$0xff]  ;;  %p221_p8 = scmp.ne.s32.totalorder %s174_s7, %s220_s8  ;;  %p226_p10 = scmp.lt.s32.totalorder %s220_s8, %s220_s8 }
  0x19   :  { %186 = vmatpush1.msk.msra.mxu0 %vm50_vm0, %v34_v2  ;;  %192 = vmatpush1.msk.msra.mxu1 %vm50_vm0, %v34_v2 }
  0x1a   :  { %187 = vmatmul.mubr.msk.f32.vlgmr.msra.gmra.mrb[0].mxu0 %vm37_vm1, %v29_v4  ;;  %189 = vmatmul.mubr.msk.f32.vlgmr.msra.gmra.mrb[0].mxu1 %vm37_vm1, %v31_v5  ;;  %p227_p11 = por %p226_p10, %p225_p9 }
  0x1b   :  { %125 = vmatprep.mubr.f32.mxu0 %v249_v0  ;;  %137 = vmatprep.mubr.f32.mxu1 %v249_v0 }
  0x1c   :  { %p228_p12 = pnand %p227_p11, %p221_p8 }
  0x1e   :  { %188 = vmatmul.mubr.msk.f32.gmra.mrb[2].mxu0 %vm37_vm1, %v30_v6  ;;  %190 = vmatmul.mubr.msk.f32.gmra.mrb[2].mxu1 %vm37_vm1, %v32_v7 }
  0xed   :  { %v121_v12 = vpop.f32.mrb[0].mxu0  ;;  %v133_v13 = vpop.f32.mrb[0].mxu1 }
  0xee   :  { %v152_v14 = vadd.f32 %v144_v8, %v121_v12  ;;  %v156_v15 = vadd.f32 %v148_v9, %v133_v13  ;;  %v123_v16 = vpop.f32.mrb[1].mxu0  ;;  %v135_v17 = vpop.f32.mrb[1].mxu1 }
  0xef   :  { %v153_v18 = vadd.f32 %v145_v10, %v123_v16  ;;  %v157_v19 = vadd.f32 %v149_v11, %v135_v17 }
  0xf0   :  { %160 = vst [vmem:[#allocation5] sm:$0xff] %v152_v14  ;;  %164 = vst [vmem:[#allocation5 + $0x20] sm:$0xff] %v156_v15 }
  0xf1   :  { %161 = vst [vmem:[#allocation5 + $0x8] sm:$0xff] %v153_v18  ;;  %165 = vst [vmem:[#allocation5 + $0x28] sm:$0xff] %v157_v19  ;;  %v127_v24 = vpop.f32.mrb[2].mxu0  ;;  %v139_v25 = vpop.f32.mrb[2].mxu1 }
  0xf2   :  { %v154_v26 = vadd.f32 %v146_v20, %v127_v24  ;;  %v158_v27 = vadd.f32 %v150_v21, %v139_v25  ;;  %v129_v28 = vpop.f32.mrb[3].mxu0  ;;  %v141_v29 = vpop.f32.mrb[3].mxu1 }
  0xf3   :  { %v155_v30 = vadd.f32 %v147_v22, %v129_v28  ;;  %v159_v31 = vadd.f32 %v151_v23, %v141_v29 }
  0xf4   :  { %162 = vst [vmem:[#allocation5 + $0x10] sm:$0xff] %v154_v26  ;;  %166 = vst [vmem:[#allocation5 + $0x30] sm:$0xff] %v158_v27 }
  0xf5   :  { %163 = vst [vmem:[#allocation5 + $0x18] sm:$0xff] %v155_v30  ;;  %167 = vst [vmem:[#allocation5 + $0x38] sm:$0xff] %v159_v31 }
  0xf6   :  { %231 = shalt.err (!%p228_p12)
}
  0xf7   :  { %s232_s11 = scalar_lea.hbm %s319_s3, 1024 }
  0xf8   :  { %p233_p13 = scmp.ne.s32.totalorder %s319_s3, %s232_s11  ;;  %p236_p0 = scmp.lt.u32.totalorder %s232_s11, %s319_s3 }
  0xfa   :  { %p238_p1 = pnand %p236_p0, %p233_p13 }
  0xfc   :  { %241 = shalt.err (!%p238_p1)
}
  0xfd   :  { %179 = dma.vmem_to_hbm [thread:$0]  %s174_s7, 1024, %s319_s3, [#allocation4], %s247_s22, %s247_s22, %s248_s23  }
  0xfe   :  { %244 = dma.done.wait [#allocation4], 1024  }
  0xff   :  { %245 = vsyncadd [#allocation4], 4294966272 }
 0x100   :  { %183 = vsyncpa [#allocation3], 1 }
 0x101   :  { %184 = vsyncpa [#allocation4], 1 }

</bundles_post_ra>
